<compile_context>
chip_gen: v6e
topology: v6e:2x2x1
jax: 0.10.0
libtpu: 0.0.40
codegen_flags: <defaults>
</compile_context>

<pallas_src>
import functools

import jax
import jax.numpy as jnp
from jax.experimental import pallas as pl
from jax.experimental.pallas import tpu as pltpu


_LANE = 128
_SUBLANE = 8
_TARGET_GRID_STEPS = 8          # >=4 per TC on v7x; plenty for pipelining on v5e/v6e
_MIN_BLOCK_BYTES = 1 * 1024 * 1024


def _round_up(x, m):
    return ((x + m - 1) // m) * m


def _vmem_limit_bytes():
    """Explicit scoped-VMEM limit: ~75% of physical, clamped to [32, 100] MiB."""
    cap = None
    try:
        cap = getattr(pltpu.get_tpu_info(), "vmem_capacity_bytes", None)
    except Exception:
        cap = None
    if not cap:
        cap = 64 * 1024 * 1024  # conservative default (v7x physical VMEM)
    return int(min(100 * 1024 * 1024, max(32 * 1024 * 1024, (cap * 3) // 4)))


def _budgets(dtype):
    """(per-block byte budget, vmem_limit_bytes), dtype- and chip-aware.

    Per grid step the pipeline holds 2x input + 2x output blocks (double
    buffered) plus a transient f32 copy of the block during the pooled
    reduction; keep that working set inside ~75% of the scoped VMEM limit.
    """
    elem = jnp.dtype(dtype).itemsize
    vmem_limit = _vmem_limit_bytes()
    mult = 4 + max(1, 4 // elem)          # f32: 5x block, bf16: 6x, fp8/int8: 8x
    block_target = int(vmem_limit * 0.75) // mult
    return block_target, vmem_limit


# --------------------------------------------------------------------------
# Fused path: whole (Bt, C, HW) slab resident per grid step (1 read + 1 write).
# --------------------------------------------------------------------------
def _eca_fused_kernel(w_ref, x_ref, o_ref, *, kernel_size, inv_hw):
    # w_ref: (K,) f32 conv taps, scalar-prefetched into SMEM.
    # x_ref / o_ref: (Bt, C, HW) block in the input dtype (no spatial padding).
    bt, c, _ = x_ref.shape

    # --- global average pool: f32 accumulation, no long-lived f32 block copy ---
    pooled = jnp.sum(x_ref[...], axis=-1, dtype=jnp.float32) * inv_hw   # (Bt, C)

    # --- conv1d along channels, 'same' zero padding, no bias (taps from SMEM) ---
    pad = (kernel_size - 1) // 2
    if pad > 0:
        zeros = jnp.zeros((bt, pad), dtype=jnp.float32)
        padded = jnp.concatenate([zeros, pooled, zeros], axis=-1)        # (Bt, C+2p)
    else:
        padded = pooled
    acc = w_ref[0] * padded[:, 0:c]
    for k in range(1, kernel_size):                                      # static unroll
        acc = acc + w_ref[k] * padded[:, k:k + c]

    # --- sigmoid gate in f32, cast to input dtype, re-read block and scale ---
    gate = jax.nn.sigmoid(acc).astype(o_ref.dtype)                       # (Bt, C)
    o_ref[...] = x_ref[...] * gate[:, :, None]


def _eca_fused(x3, w_taps, kernel_size, hw, block_target_bytes, vmem_limit):
    b, c, _ = x3.shape
    elem = jnp.dtype(x3.dtype).itemsize
    # VMEM footprint per batch row (account for lane/sublane layout padding).
    per_batch = _round_up(c, _SUBLANE) * _round_up(hw, _LANE) * elem

    # Batch tile: prefer >= _TARGET_GRID_STEPS grid steps (both v7x TCs + DMA/
    # compute overlap), subject to the VMEM budget; for small batches maximize
    # steps while keeping blocks >= ~1 MiB, else just take the largest block.
    bt_cap = max(1, min(b, block_target_bytes // max(1, per_batch)))
    divs = [d for d in range(1, bt_cap + 1) if b % d == 0] or [1]
    good = [d for d in divs if b // d >= _TARGET_GRID_STEPS]
    if good:
        bt = max(good)
    else:
        ok = [d for d in divs if d * per_batch >= _MIN_BLOCK_BYTES]
        bt = min(ok) if ok else max(divs)

    kern = functools.partial(_eca_fused_kernel,
                             kernel_size=kernel_size, inv_hw=1.0 / hw)
    cost = pl.CostEstimate(flops=2 * b * c * hw,
                           transcendentals=b * c,
                           bytes_accessed=2 * b * c * hw * elem)

    return pl.pallas_call(
        kern,
        out_shape=jax.ShapeDtypeStruct((b, c, hw), x3.dtype),
        grid_spec=pltpu.PrefetchScalarGridSpec(
            num_scalar_prefetch=1,                    # conv taps -> SMEM
            grid=(b // bt,),
            in_specs=[pl.BlockSpec((bt, c, hw), lambda i, w: (i, 0, 0))],
            out_specs=pl.BlockSpec((bt, c, hw), lambda i, w: (i, 0, 0)),
        ),
        compiler_params=pltpu.CompilerParams(
            dimension_semantics=("parallel",),
            vmem_limit_bytes=vmem_limit),
        cost_estimate=cost,
    )(w_taps, x3)


# --------------------------------------------------------------------------
# Fallback for very large C*HW: pass 1 streams tiles to accumulate the pooled
# sums, tiny conv+sigmoid on (B, C) in XLA, pass 2 streams tiles to apply the
# gate.  Prefers channel tiling (no spatial padding); spatial tiling only when
# even an 8-channel full-HW block would blow the budget.
# --------------------------------------------------------------------------
def _eca_pool_kernel(x_ref, sum_ref):
    @pl.when(pl.program_id(2) == 0)
    def _():
        sum_ref[...] = jnp.zeros_like(sum_ref)
    sum_ref[...] += jnp.sum(x_ref[...], axis=-1, keepdims=True,
                            dtype=jnp.float32)


def _eca_scale_kernel(g_ref, x_ref, o_ref):
    o_ref[...] = x_ref[...] * g_ref[...]


def _eca_two_pass(x3, w_taps, kernel_size, hw, block_target_bytes, vmem_limit):
    b, c, _ = x3.shape
    elem = jnp.dtype(x3.dtype).itemsize
    per_ch = _round_up(hw, _LANE) * elem              # bytes per channel row (padded)

    cp, ct = c, c
    hwp, t_hw = hw, hw
    if c > _SUBLANE and _SUBLANE * per_ch <= block_target_bytes:
        # Channel-tiled: block (1, Ct, HW) keeps the full spatial extent, so no
        # spatial padding / trailing slice at all.  Channels padded to 8 only
        # if needed for the (8,128) block constraint (zero channels are
        # conv-padding-equivalent, so semantics are unchanged).
        cp = _round_up(c, _SUBLANE)
        ct = min(cp, max(_SUBLANE,
                         (block_target_bytes // per_ch) // _SUBLANE * _SUBLANE))
        while cp % ct:
            ct -= _SUBLANE
    else:
        # Spatial tiling (huge HW per channel): pad HW to one lane multiple and
        # pick a 128-multiple tile that divides it exactly (no over-padding).
        hwp = _round_up(hw, _LANE)
        t_hw = max(_LANE, (block_target_bytes // max(1, c * elem)) // _LANE * _LANE)
        t_hw = min(t_hw, hwp)
        while hwp % t_hw:
            t_hw -= _LANE
    n_c, n_hw = cp // ct, hwp // t_hw

    xw = x3
    if cp != c or hwp != hw:
        xw = jnp.pad(x3, ((0, 0), (0, cp - c), (0, hwp - hw)))

    # Pass 1: pooled sums per (batch, channel).
    sums = pl.pallas_call(
        _eca_pool_kernel,
        out_shape=jax.ShapeDtypeStruct((b, cp, 1), jnp.float32),
        grid=(b, n_c, n_hw),
        in_specs=[pl.BlockSpec((1, ct, t_hw), lambda i, j, t: (i, j, t))],
        out_specs=pl.BlockSpec((1, ct, 1), lambda i, j, t: (i, j, 0)),
        compiler_params=pltpu.CompilerParams(
            dimension_semantics=("parallel", "parallel", "arbitrary"),
            vmem_limit_bytes=vmem_limit),
    )(xw)

    # Tiny (B, Cp) conv1d over channels + sigmoid in plain JAX (negligible).
    pooled = sums[:, :, 0] * (1.0 / hw)
    pad = (kernel_size - 1) // 2
    yp = jnp.pad(pooled, ((0, 0), (pad, pad)))
    acc = jnp.zeros_like(pooled)
    for k in range(kernel_size):
        acc = acc + w_taps[k] * yp[:, k:k + cp]
    gate = jax.nn.sigmoid(acc)[:, :, None].astype(x3.dtype)   # (B, Cp, 1)

    # Pass 2: apply the gate (multiply in the input dtype).
    out = pl.pallas_call(
        _eca_scale_kernel,
        out_shape=jax.ShapeDtypeStruct((b, cp, hwp), x3.dtype),
        grid=(b, n_c, n_hw),
        in_specs=[pl.BlockSpec((1, ct, 1), lambda i, j, t: (i, j, 0)),
                  pl.BlockSpec((1, ct, t_hw), lambda i, j, t: (i, j, t))],
        out_specs=pl.BlockSpec((1, ct, t_hw), lambda i, j, t: (i, j, t)),
        compiler_params=pltpu.CompilerParams(
            dimension_semantics=("parallel", "parallel", "parallel"),
            vmem_limit_bytes=vmem_limit),
    )(gate, xw)
    if cp != c or hwp != hw:
        out = out[:, :c, :hw]
    return out


# --------------------------------------------------------------------------
# Public wrapper
# --------------------------------------------------------------------------
def eca_layer(x, conv_weight, kernel_size=3, *,
              block_target_bytes=None, vmem_limit_bytes=None):
    """x: (B, C, H, W); conv_weight: (K,) taps of nn.Conv1d(1, 1, K, bias=False)."""
    assert kernel_size % 2 == 1, "ECA_Layer requires an odd conv kernel size."
    b, c, h, w = x.shape
    hw = h * w
    elem = jnp.dtype(x.dtype).itemsize

    bt_default, vl_default = _budgets(x.dtype)
    block_target = block_target_bytes or bt_default
    vmem_limit = vmem_limit_bytes or vl_default

    w_taps = jnp.asarray(conv_weight, dtype=jnp.float32).reshape(kernel_size)
    x3 = x.reshape(b, c, hw)

    per_batch = _round_up(c, _SUBLANE) * _round_up(hw, _LANE) * elem
    if per_batch <= block_target:
        out3 = _eca_fused(x3, w_taps, kernel_size, hw, block_target, vmem_limit)
    else:
        out3 = _eca_two_pass(x3, w_taps, kernel_size, hw, block_target, vmem_limit)
    return out3.reshape(b, c, h, w)


def eca_reference(x, conv_weight, kernel_size=3):
    # Pure-JAX reference for validation.
    b, c, h, w = x.shape
    y = jnp.mean(x.astype(jnp.float32), axis=(2, 3))   # (B, C)
    pad = (kernel_size - 1) // 2
    yp = jnp.pad(y, ((0, 0), (pad, pad)))
    acc = jnp.zeros_like(y)
    for k in range(kernel_size):
        acc = acc + conv_weight[k] * yp[:, k:k + c]
    gate = jax.nn.sigmoid(acc)                          # (B, C)
    return (x.astype(jnp.float32) * gate[:, :, None, None]).astype(x.dtype)


if __name__ == "__main__":
    key = jax.random.PRNGKey(0)
    K = 3
    conv_weight = jnp.array([0.25, 0.5, -0.125], dtype=jnp.float32)

    # Basic fused path.
    B, C, H, W = 2, 4, 16, 16
    x = jax.random.normal(key, (B, C, H, W), dtype=jnp.float32)
    out = jax.block_until_ready(eca_layer(x, conv_weight, kernel_size=K))
    ref = eca_reference(x, conv_weight, kernel_size=K)
    assert out.shape == (B, C, H, W)
    assert jnp.allclose(out, ref, atol=1e-5, rtol=1e-5)

    # Non-128-multiple spatial size (14*14=196): fused path, no padding needed.
    x2 = jax.random.normal(jax.random.PRNGKey(1), (4, 8, 14, 14),
                           dtype=jnp.float32)
    out2 = jax.block_until_ready(eca_layer(x2, conv_weight, kernel_size=K))
    ref2 = eca_reference(x2, conv_weight, kernel_size=K)
    assert jnp.allclose(out2, ref2, atol=1e-5, rtol=1e-5)

    # bf16 input: f32 pool accumulation, bf16 gate multiply.
    x_bf = x2.astype(jnp.bfloat16)
    out_bf = jax.block_until_ready(eca_layer(x_bf, conv_weight, kernel_size=K))
    ref_bf = eca_reference(x_bf, conv_weight, kernel_size=K)
    assert jnp.allclose(out_bf.astype(jnp.float32), ref_bf.astype(jnp.float32),
                        atol=5e-2, rtol=5e-2)

    # Force the spatially-tiled two-pass fallback (tiny budget): exercises
    # multi-tile pooled accumulation with HW padded only to one lane multiple.
    out3 = jax.block_until_ready(
        eca_layer(x2, conv_weight, kernel_size=K, block_target_bytes=4096))
    assert jnp.allclose(out3, ref2, atol=1e-5, rtol=1e-5)

    # Force the channel-tiled two-pass fallback (no spatial padding at all).
    x4 = jax.random.normal(jax.random.PRNGKey(2), (2, 16, 14, 14),
                           dtype=jnp.float32)
    ref4 = eca_reference(x4, conv_weight, kernel_size=K)
    out4 = jax.block_until_ready(
        eca_layer(x4, conv_weight, kernel_size=K, block_target_bytes=8192))
    assert jnp.allclose(out4, ref4, atol=1e-5, rtol=1e-5)

    print("KERNEL_OK")
</pallas_src>

<mosaic_0001>
module attributes {stable_mosaic.version = 11 : i64} {
  func.func @_eca_fused_kernel(%arg0: i32, %arg1: memref<3xf32, #tpu.memory_space<smem>>, %arg2: memref<2x4x256xf32, #tpu.memory_space<vmem>>, %arg3: memref<2x4x256xf32, #tpu.memory_space<vmem>>) attributes {dimension_semantics = [#tpu.dimension_semantics<parallel>], iteration_bounds = array<i64: 1>, scalar_prefetch = 1 : i64, scratch_operands = 0 : i64, tpu.core_type = #tpu.core_type<tc>, window_params = [{transform_indices = @transform_0, window_bounds = array<i64: 2, 4, 256>}, {transform_indices = @transform_1, window_bounds = array<i64: 2, 4, 256>}]} {
    %c0 = arith.constant 0 : index
    %c0_0 = arith.constant 0 : index
    %c0_1 = arith.constant 0 : index
    %0 = vector.load %arg2[%c0, %c0_0, %c0_1] : memref<2x4x256xf32, #tpu.memory_space<vmem>>, vector<2x4x256xf32>
    %cst = arith.constant dense<0.000000e+00> : vector<2x4xf32>
    %1 = vector.multi_reduction <add>, %0, %cst [2] : vector<2x4x256xf32> to vector<2x4xf32>
    %cst_2 = arith.constant 3.906250e-03 : f32
    %2 = vector.broadcast %cst_2 : f32 to vector<2x4xf32>
    %3 = arith.mulf %1, %2 : vector<2x4xf32>
    %cst_3 = arith.constant 0.000000e+00 : f32
    %4 = vector.broadcast %cst_3 : f32 to vector<2x1xf32>
    %5 = tpu.concatenate %4, %3, %4 in 1 : vector<2x1xf32>, vector<2x4xf32>, vector<2x1xf32> -> vector<2x6xf32>
    %c0_4 = arith.constant 0 : index
    %6 = memref.load %arg1[%c0_4] : memref<3xf32, #tpu.memory_space<smem>>
    %7 = vector.extract_strided_slice %5 {offsets = [0, 0], sizes = [2, 4], strides = [1, 1]} : vector<2x6xf32> to vector<2x4xf32>
    %8 = vector.broadcast %6 : f32 to vector<2x4xf32>
    %9 = arith.mulf %8, %7 : vector<2x4xf32>
    %c1 = arith.constant 1 : index
    %10 = memref.load %arg1[%c1] : memref<3xf32, #tpu.memory_space<smem>>
    %11 = vector.extract_strided_slice %5 {offsets = [0, 1], sizes = [2, 4], strides = [1, 1]} : vector<2x6xf32> to vector<2x4xf32>
    %12 = vector.broadcast %10 : f32 to vector<2x4xf32>
    %13 = arith.mulf %12, %11 : vector<2x4xf32>
    %14 = arith.addf %9, %13 : vector<2x4xf32>
    %c2 = arith.constant 2 : index
    %15 = memref.load %arg1[%c2] : memref<3xf32, #tpu.memory_space<smem>>
    %16 = vector.extract_strided_slice %5 {offsets = [0, 2], sizes = [2, 4], strides = [1, 1]} : vector<2x6xf32> to vector<2x4xf32>
    %17 = vector.broadcast %15 : f32 to vector<2x4xf32>
    %18 = arith.mulf %17, %16 : vector<2x4xf32>
    %19 = arith.addf %14, %18 : vector<2x4xf32>
    %20 = arith.negf %19 : vector<2x4xf32>
    %21 = math.exp %20 : vector<2x4xf32>
    %cst_5 = arith.constant 1.000000e+00 : f32
    %22 = vector.broadcast %cst_5 : f32 to vector<2x4xf32>
    %23 = arith.addf %22, %21 : vector<2x4xf32>
    %24 = arith.divf %22, %23 : vector<2x4xf32>
    %c0_6 = arith.constant 0 : index
    %c0_7 = arith.constant 0 : index
    %c0_8 = arith.constant 0 : index
    %25 = vector.load %arg2[%c0_6, %c0_7, %c0_8] : memref<2x4x256xf32, #tpu.memory_space<vmem>>, vector<2x4x256xf32>
    %26 = vector.shape_cast %24 : vector<2x4xf32> to vector<2x4x1xf32>
    %27 = vector.broadcast %26 : vector<2x4x1xf32> to vector<2x4x256xf32>
    %28 = arith.mulf %25, %27 : vector<2x4x256xf32>
    %c0_9 = arith.constant 0 : index
    %c0_10 = arith.constant 0 : index
    %c0_11 = arith.constant 0 : index
    %29 = vector.load %arg3[%c0_9, %c0_10, %c0_11] : memref<2x4x256xf32, #tpu.memory_space<vmem>>, vector<2x4x256xf32>
    tpu.vector_store %arg3[%c0_9, %c0_10, %c0_11], %28 {strides = array<i32>} : memref<2x4x256xf32, #tpu.memory_space<vmem>>, vector<2x4x256xf32>,
    return
  }
  func.func @transform_0(%arg0: i32, %arg1: memref<3xf32, #tpu.memory_space<smem>>) -> (i32, i32, i32) {
    %c0_i32 = arith.constant 0 : i32
    %c0_i32_0 = arith.constant 0 : i32
    %c0_i32_1 = arith.constant 0 : i32
    return %arg0, %c0_i32, %c0_i32_0 : i32, i32, i32
  }
  func.func @transform_1(%arg0: i32, %arg1: memref<3xf32, #tpu.memory_space<smem>>) -> (i32, i32, i32) {
    %c0_i32 = arith.constant 0 : i32
    %c0_i32_0 = arith.constant 0 : i32
    %c0_i32_1 = arith.constant 0 : i32
    return %arg0, %c0_i32, %c0_i32_0 : i32, i32, i32
  }
}

</mosaic_0001>

<bundles_post_ra>
// kernel: tpu_custom_call.1
= control target key start
LH: loop header
LB: loop body
LE: loop exit
PB: predicated region body
PF: predicated region fallthrough
CT: control target
= control target key end

     0   :  { %s218_s9 = smov [#allocation3]   ;;  %s268_s0 = inlined_call_operand.hbm [shape: f32[3], index: 0, kind: input, shape index: {}]   ;;  %s269_s1 = inlined_call_operand.hbm [shape: f32[2,4,256], index: 1, kind: input, shape index: {}]   ;;  %s270_s2 = inlined_call_operand.hbm [shape: f32[2,4,256], index: 2, kind: output, shape index: {}]  }
   0x1   :  { %8 = dma.hbm_to_smem %s268_s0, 16, %s218_s9, [#allocation2] }
   0x2   :  { %212 = dma.done.wait [#allocation2], 16 }
   0x3   :  { %213 = vsyncadd [#allocation2], 4294967280 }
   0x4   :  { %10 = sfence }
   0x5   :  { %11 = vsyncpa [#allocation5], 0 }
   0x6   :  { %12 = vsyncpa [#allocation6], 0  ;;  %s219_s12 = smov [#allocation4]  }
   0x7   :  { %s18_s13 = sshll.u32 %s219_s12, 4  ;;  %s19_s13 = int_to_ptr.vmem [resolvable:$true] %s18_s13 }
   0x8   :  { %s180_s14 = scalar_lea.vmem %s19_s13, 256  ;;  %p185_p1 = scmp.lt.s32.totalorder %s19_s13, %s19_s13 }
   0x9   :  { %p181_p0 = scmp.ne.s32.totalorder %s19_s13, %s180_s14  ;;  %p186_p2 = scmp.lt.s32.totalorder %s180_s14, %s180_s14 }
   0xb   :  { %p187_p3 = por %p186_p2, %p185_p1 }
   0xd   :  { %p188_p4 = pnand %p187_p3, %p181_p0 }
   0xf   :  { %191 = shalt.err (!%p188_p4)
}
  0x10   :  { %s220_s15 = smov 128   ;;  %s221_s16 = smov 8  }
  0x11   :  { %24 = dma.hbm_to_vmem [thread:$0]  %s269_s1, 256, %s19_s13, [#allocation5], %s220_s15, %s220_s15, %s221_s16  }
  0x12   :  { %214 = dma.done.wait [#allocation5], 256  }
  0x13   :  { %215 = vsyncadd [#allocation5], 4294967040  ;;  %vm36_vm0 = vcmask 1043456   ;;  %v250_v0 = vld [vmem:[#allocation4] sm:$0xff]  ;;  %v252_v1 = vld [vmem:[#allocation4 + $0x8] sm:$0xff]  ;;  %v51_v10 = vlaneseq  ;;  %s147_s1 = sld [smem:[#allocation3 + $0x1]] }
  0x14   :  { %v32_v2 = vcombine.high %v250_v0, %v250_v0  ;;  %v37_v3 = vsel %vm36_vm0, %v250_v0, 0.0  ;;  %v33_v4 = vcombine.high %v252_v1, %v252_v1  ;;  %v42_v6 = vsel %vm36_vm0, %v252_v1, 0.0  ;;  %s148_s18 = sld [smem:[#allocation3 + $0x2]]  ;;  %s222_s19 = smov 127  }
  0x15   :  { %v52_v11 = vand.u32 127, %v51_v10  ;;  %v55_v13 = vshrl.u32 %v51_v10, 7  ;;  %vm62_vm1 = vcmask 1041409   ;;  %vm65_vm2 = vcmask 7168   ;;  %s223_s20 = smov 126   ;;  %s69_s21 = sld [smem:[#allocation3]] }
  0x16   :  { %v38_v5 = vsel %vm36_vm0, %v32_v2, 0.0  ;;  %v43_v7 = vsel %vm36_vm0, %v33_v4, 0.0  ;;  %vm67_vm3 = vcmask 39936   ;;  %v224_v42 = vmov 839922192   ;;  %s225_s22 = smov [#allocation7]  }
  0x17   :  { %v39_v8 = vadd.f32 %v38_v5, %v37_v3  ;;  %v44_v9 = vadd.f32 %v43_v7, %v42_v6  ;;  %v53_v12 = vadd.s32 4294967295, %v52_v11  ;;  %v103_v37 = vsub.s32 1, %v55_v13  ;;  %s135_s23 = sshll.u32 %s225_s22, 4  ;;  %s136_s23 = int_to_ptr.vmem [resolvable:$true] %s135_s23 }
  0x18   :  { %v96_v38 = vsub.s32 0, %v55_v13  ;;  %v111_v43 = vunpack.c.l.s4 %v224_v42  ;;  %s192_s24 = scalar_lea.vmem %s136_s23, 256  ;;  %p197_p6 = scmp.lt.s32.totalorder %s136_s23, %s136_s23 }
  0x19   :  { %40 = vadd.xlane.f32.xlu0 %v39_v8  ;;  %v56_v15 = vsub.s32 %v53_v12, %v55_v13  ;;  %v73_v22 = vstv %s147_s1  ;;  %p193_p5 = scmp.ne.s32.totalorder %s136_s23, %s192_s24  ;;  %p198_p7 = scmp.lt.s32.totalorder %s192_s24, %s192_s24 }
  0x1a   :  { %v81_v26 = vstv %s148_s18  ;;  %v112_v44 = vunpack.c.0.s8 %v111_v43 }
  0x1b   :  { %v70_v28 = vstv %s69_s21  ;;  %p199_p8 = por %p198_p7, %p197_p6 }
  0x1c   :  { %v115_v45 = vsub.s32 %v112_v44, %v55_v13 }
  0x1d   :  { %45 = vadd.xlane.f32.xlu0 %v44_v9  ;;  %p200_p9 = pnand %p199_p8, %p193_p5 }
  0xa2   :  { %v41_v14 = vpop.xlane.xlu0 %40 }
  0xa3   :  { %v47_v16 = vmul.f32 0.00390625, %v41_v14 }
  0xa5   :  { %v57_v19 = vrot.slane %v47_v16, %v56_v15 }
  0xa6   :  { %v46_v17 = vpop.xlane.xlu0 %45 }
  0xa7   :  { %v48_v18 = vmul.f32 0.00390625, %v46_v17 }
  0xa9   :  { %v61_v20 = vrot.slane %v48_v18, %v56_v15 }
  0xab   :  { %v63_v21 = vsel %vm62_vm1, %v61_v20, %v57_v19 }
  0xac   :  { %v66_v23 = vsel %vm65_vm2, 0.0, %v63_v21 }
  0xad   :  { %v68_v24 = vsel %vm67_vm3, %v66_v23, 0.0 }
  0xae   :  { %v74_v25 = vmul.f32 %v73_v22, %v68_v24  ;;  %v82_v27 = vmul.f32 %v81_v26, %v68_v24  ;;  %v71_v30 = vmul.f32 %v70_v28, %v68_v24 }
  0xb0   :  { %76 = vrot.lane.b32.xlu1 %v74_v25, %s222_s19 }
  0xb4   :  { %84 = vrot.lane.b32.xlu1 %v82_v27, %s223_s20 }
 0x122   :  { %v77_v29 = vpop.permute.xlu1 %76 }
 0x123   :  { %v79_v31 = vadd.f32 %v77_v29, %v71_v30 }
 0x126   :  { %v85_v32 = vpop.permute.xlu1 %84 }
 0x127   :  { %v87_v33 = vadd.f32 %v85_v32, %v79_v31 }
 0x129   :  { %v149_v34 = vmul.f32 -1.442695, %v87_v33 }
 0x12b   :  { %160 = vpow2.f32 %v149_v34 }
 0x138   :  { %v161_v35 = vpop.eup %160 }
 0x139   :  { %v91_v36 = vadd.f32 1.0, %v161_v35 }
 0x13b   :  { %162 = vrcp.f32 %v91_v36 }
 0x148   :  { %v163_v39 = vpop.eup %162 }
 0x149   :  { %v104_v40 = vrot.slane %v163_v39, %v103_v37  ;;  %v97_v41 = vrot.slane %v163_v39, %v96_v38 }
 0x14b   :  { %106 = vbcast.lane.b32.xlu1 %v104_v40, 256  ;;  %99 = vbcast.lane.b32.xlu0 %v97_v41, 256 }
 0x1bd   :  { %v107_v46 = vpop.permute.xlu1 %106  ;;  %v100_v47 = vpop.permute.xlu0 %99 }
 0x1be   :  { %v123_v48 = vrot.slane %v107_v46, %v115_v45  ;;  %v116_v49 = vrot.slane %v100_v47, %v115_v45 }
 0x1c0   :  { %v127_v50 = vmul.f32 %v123_v48, %v252_v1  ;;  %v126_v51 = vmul.f32 %v116_v49, %v250_v0 }
 0x1c2   :  { %129 = vst [vmem:[#allocation7 + $0x8] sm:$0xff] %v127_v50  ;;  %128 = vst [vmem:[#allocation7] sm:$0xff] %v126_v51 }
 0x1c3   :  { %203 = shalt.err (!%p200_p9)
}
 0x1c4   :  { %141 = dma.vmem_to_hbm [thread:$0]  %s136_s23, 256, %s270_s2, [#allocation6], %s220_s15, %s220_s15, %s221_s16  }
 0x1c5   :  { %216 = dma.done.wait [#allocation6], 256  }
 0x1c6   :  { %217 = vsyncadd [#allocation6], 4294967040 }
 0x1c7   :  { %145 = vsyncpa [#allocation5], 1 }
 0x1c8   :  { %146 = vsyncpa [#allocation6], 1 }

</bundles_post_ra>
